<compile_context>
chip_gen: v6e
topology: v6e:2x2x1
jax: 0.10.0
libtpu: 0.0.40
codegen_flags: <defaults>
</compile_context>

<pallas_src>
import jax
import jax.numpy as jnp
from jax.experimental import pallas as pl
from jax.experimental.pallas import tpu as pltpu


_MXU_DTYPE = jnp.bfloat16   # MXU operand dtype for the wide Linear layers
_SMALL_K = 8                # layers with in_dim <= this run as f32 VPU FMAs


def _cparams():
    return pltpu.CompilerParams(
        dimension_semantics=("parallel",),
        vmem_limit_bytes=32 * 1024 * 1024,   # explicit, safe on v5e/v6e/v7x
    )


def _const_spec(arr):
    """Whole-array block with a constant index_map (stays VMEM-resident)."""
    nd = arr.ndim
    return pl.BlockSpec(arr.shape, lambda i, _nd=nd: (0,) * _nd)


def _cast_layers(layers):
    """bf16 weights for the wide (MXU) layers; small-K weights / biases stay f32."""
    out = []
    for w, b in layers:
        ww = w.astype(_MXU_DTYPE) if w.shape[0] > _SMALL_K else w.astype(jnp.float32)
        out.append((ww, b.astype(jnp.float32)))
    return out


def _apply_layers(h, wb_refs, acts):
    """Fused Linear(+bias) chain; ReLU6 after layer i iff acts[i].

    * in_dim <= _SMALL_K: the (rows, 3/4) input tile is lane-sparse so the
      layer is computed as K VPU broadcast-FMAs in f32.
    * Wide layers: bf16 operands on the MXU, f32 accumulation, f32 elementwise.
    """
    h = h.astype(jnp.float32)
    for (w_ref, b_ref), act in zip(wb_refs, acts):
        w = w_ref[...]
        b = b_ref[...]
        k_dim = w.shape[0]
        if k_dim <= _SMALL_K:
            wf = w.astype(jnp.float32)
            acc = h[:, 0:1] * wf[0:1, :] + b
            for c in range(1, k_dim):
                acc = acc + h[:, c:c + 1] * wf[c:c + 1, :]
            h = acc
        else:
            h = jnp.dot(h.astype(w.dtype), w, preferred_element_type=jnp.float32) + b
        if act:
            h = jnp.clip(h, 0.0, 6.0)   # ReLU6
    return h


# ------------------------------ MLP kernel ----------------------------------

def _make_mlp_kernel(acts, n_layers):
    def kernel(*refs):
        x_ref = refs[0]
        out_ref = refs[-1]
        wb = [(refs[1 + 2 * i], refs[2 + 2 * i]) for i in range(n_layers)]
        out_ref[...] = _apply_layers(x_ref[...], wb, acts).astype(out_ref.dtype)
    return kernel


def mlp_pallas(x2d, layers, acts, *, tile_rows=1024):
    """x2d: (M, in).  layers: [(w(in,out), b(1,out)), ...].  Row-tiled grid so
    the working set stays well inside scoped VMEM and the DMA pipelines."""
    M, in_dim = x2d.shape
    out_dim = layers[-1][0].shape[1]
    layers = _cast_layers(layers)
    flat = [t for wb in layers for t in wb]
    TM = M if M <= tile_rows else tile_rows       # tile_rows is a multiple of 8
    grid = (pl.cdiv(M, TM),)
    in_specs = [pl.BlockSpec((TM, in_dim), lambda i: (i, 0))]
    in_specs += [_const_spec(a) for a in flat]    # weights stay resident
    return pl.pallas_call(
        _make_mlp_kernel(tuple(acts), len(layers)),
        out_shape=jax.ShapeDtypeStruct((M, out_dim), jnp.float32),
        grid=grid,
        in_specs=in_specs,
        out_specs=pl.BlockSpec((TM, out_dim), lambda i: (i, 0)),
        compiler_params=_cparams(),
    )(x2d, *flat)


# ------------------------------ GCN kernel ----------------------------------

def _make_gcn_kernel(n_embed, embed_acts, n_gcn):
    """Per grid step over a tile of TB agents i:
         h_i = embed_n(dpdv_last[i])
         repeat num_gcn_layers: h_i = relu6(Linear(adj[i] @ h_i))
    torch.matmul's broadcast semantics index the adjacency slice by the *agent*
    index i.  All TB agents are processed by batched einsums / a single fused
    (TB*I, F)x(F, F) MXU matmul per layer."""
    def kernel(*refs):
        dpdv_ref, adj_ref = refs[0], refs[1]
        out_ref = refs[-1]
        wb = refs[2:-1]
        embed_wb = [(wb[2 * i], wb[2 * i + 1]) for i in range(n_embed)]
        gcn_wb = [(wb[2 * (n_embed + i)], wb[2 * (n_embed + i) + 1])
                  for i in range(n_gcn)]
        TB, J, in_dim = dpdv_ref.shape
        I = adj_ref.shape[1]
        # embed_n on all TB*J neighbour rows at once.
        h = _apply_layers(dpdv_ref[...].reshape(TB * J, in_dim),
                          embed_wb, embed_acts)                  # (TB*J, F0)
        h = h.reshape(TB, J, h.shape[-1])
        a = adj_ref[...]                                         # (TB, I, J)
        for w_ref, b_ref in gcn_wb:
            # adjacency aggregation, batched over the TB agents (MXU).
            h = jnp.einsum('bij,bjf->bif', a, h,
                           preferred_element_type=jnp.float32)   # (TB, I, F)
            w = w_ref[...]
            b = b_ref[...]
            f_out = w.shape[1]
            h = jnp.dot(h.reshape(TB * I, h.shape[-1]).astype(w.dtype), w,
                        preferred_element_type=jnp.float32) + b
            h = jnp.clip(h, 0.0, 6.0).reshape(TB, I, f_out)      # ReLU6
        out_ref[...] = h.astype(out_ref.dtype)
    return kernel


def gcn_pallas(dpdv_last, adj, embed_layers, embed_acts, gcn_layers, *, tile_batch=8):
    """dpdv_last: (N, Nn, 4) last-timestep [dp, dv].  adj: (T, N, Nn) full
    adjacency, read directly via the index_map (no adjB/nB materialisation).
    Requires N == Nn == T (same constraint as torch.matmul's broadcast)."""
    N, J, in_dim = dpdv_last.shape
    I = adj.shape[1]
    F = gcn_layers[-1][0].shape[1]
    embed_layers = _cast_layers(embed_layers)
    gcn_layers = _cast_layers(gcn_layers)
    flat = ([t for wb in embed_layers for t in wb]
            + [t for wb in gcn_layers for t in wb])
    TB = N if N <= tile_batch else tile_batch
    grid = (pl.cdiv(N, TB),)
    in_specs = [
        pl.BlockSpec((TB, J, in_dim), lambda b: (b, 0, 0)),
        pl.BlockSpec((TB, I, J), lambda b: (b, 0, 0)),   # adj[i]: agent-indexed
    ] + [_const_spec(a) for a in flat]
    return pl.pallas_call(
        _make_gcn_kernel(len(embed_layers), tuple(embed_acts), len(gcn_layers)),
        out_shape=jax.ShapeDtypeStruct((N, I, F), jnp.float32),
        grid=grid,
        in_specs=in_specs,
        out_specs=pl.BlockSpec((TB, I, F), lambda b: (b, 0, 0)),
        compiler_params=_cparams(),
    )(dpdv_last, adj, *flat)


# --------------------------- attention kernel --------------------------------

def _make_attention_kernel(n_q, q_acts, fn_dim):
    def kernel(*refs):
        s_ref, k_ref, m_ref, n_ref = refs[:4]
        out_ref = refs[-1]
        wb = refs[4:-1]
        q_wb = [(wb[2 * i], wb[2 * i + 1]) for i in range(n_q)]
        s = s_ref[...]                                     # (TN, Fs)
        q = _apply_layers(s, q_wb, q_acts)                 # (TN, Dq) fused embed_q
        k = k_ref[...]                                     # (TN, Nn, Dq)
        # e = (k @ q.unsqueeze(-1)).squeeze(-1): MXU contraction over Dq.
        e = jnp.einsum('nqd,nkd->nqk', q[:, None, :], k,
                       preferred_element_type=jnp.float32)          # (TN, 1, Nn)
        e = jnp.where(e >= 0, e, 0.2 * e)                  # LeakyReLU(0.2)
        m = m_ref[...]                                     # (TN, Nn) float {0,1}
        e = jnp.where(m[:, None, :] > 0, e, -jnp.inf)      # e[~mask] = -inf
        p = jnp.exp(e - jnp.max(e, axis=-1, keepdims=True))
        att = p / jnp.sum(p, axis=-1, keepdims=True)
        att = jnp.where(att != att, 0.0, att)              # softmax().nan_to_num()
        n = n_ref[...]                                     # (TN, J, Fn)
        # x_t = att @ n: MXU contraction over the neighbour axis.
        agg = jnp.einsum('nqk,nkf->nqf', att, n,
                         preferred_element_type=jnp.float32)        # (TN, 1, Fn)
        out_ref[:, :, :fn_dim] = agg                       # h = cat(x_t, s)
        out_ref[:, :, fn_dim:] = s[:, None, :]
    return kernel


def attention_pallas(s, k, mask_f, n_gcn, q_layers, q_acts, *, tile_rows=128):
    """Last-timestep attention, row-tiled over agents; embed_q fused in."""
    N, Fs = s.shape
    Nn, Dq = k.shape[1], k.shape[2]
    J, Fn = n_gcn.shape[1], n_gcn.shape[2]
    H = Fn + Fs
    q_layers = _cast_layers(q_layers)
    flat = [t for wb in q_layers for t in wb]
    TN = N if N <= tile_rows else tile_rows
    grid = (pl.cdiv(N, TN),)
    in_specs = [
        pl.BlockSpec((TN, Fs), lambda i: (i, 0)),
        pl.BlockSpec((TN, Nn, Dq), lambda i: (i, 0, 0)),
        pl.BlockSpec((TN, Nn), lambda i: (i, 0)),
        pl.BlockSpec((TN, J, Fn), lambda i: (i, 0, 0)),
    ] + [_const_spec(a) for a in flat]
    out = pl.pallas_call(
        _make_attention_kernel(len(q_layers), tuple(q_acts), Fn),
        out_shape=jax.ShapeDtypeStruct((N, 1, H), jnp.float32),
        grid=grid,
        in_specs=in_specs,
        out_specs=pl.BlockSpec((TN, 1, H), lambda i: (i, 0, 0)),
        compiler_params=_cparams(),
    )(s, k, mask_f, n_gcn, *flat)
    return out.reshape(N, H)


# ------------------------ fused tail (p_z + dec) kernel -----------------------

def _make_tail_kernel(n_pz, pz_acts, n_dec, dec_acts, z_dim):
    def kernel(*refs):
        h_ref = refs[0]
        out_ref = refs[-1]
        wb = refs[1:-1]
        pz_wb = [(wb[2 * i], wb[2 * i + 1]) for i in range(n_pz)]
        dec_wb = [(wb[2 * (n_pz + i)], wb[2 * (n_pz + i) + 1]) for i in range(n_dec)]
        h = h_ref[...]
        z = _apply_layers(h, pz_wb, pz_acts)               # p_z(h).mean
        # dec layer 0 on cat(z, h): fold the concat into a split-weight matmul.
        w1 = dec_wb[0][0][...]
        b1 = dec_wb[0][1][...]
        hz = (jnp.dot(z.astype(w1.dtype), w1[:z_dim, :],
                      preferred_element_type=jnp.float32)
              + jnp.dot(h.astype(w1.dtype), w1[z_dim:, :],
                        preferred_element_type=jnp.float32)
              + b1)
        if dec_acts[0]:
            hz = jnp.clip(hz, 0.0, 6.0)
        d = _apply_layers(hz, dec_wb[1:], dec_acts[1:])
        out_ref[...] = d.astype(out_ref.dtype)
    return kernel


def tail_pallas(h, pz_layers, pz_acts, dec_layers, dec_acts, *, tile_rows=256):
    N, H = h.shape
    z_dim = pz_layers[-1][0].shape[1]
    out_dim = dec_layers[-1][0].shape[1]
    pz_layers = _cast_layers(pz_layers)
    dec_layers = _cast_layers(dec_layers)
    flat = ([t for wb in pz_layers for t in wb]
            + [t for wb in dec_layers for t in wb])
    TN = N if N <= tile_rows else tile_rows
    grid = (pl.cdiv(N, TN),)
    in_specs = [pl.BlockSpec((TN, H), lambda i: (i, 0))] + [_const_spec(a) for a in flat]
    return pl.pallas_call(
        _make_tail_kernel(len(pz_layers), tuple(pz_acts), len(dec_layers),
                          tuple(dec_acts), z_dim),
        out_shape=jax.ShapeDtypeStruct((N, out_dim), jnp.float32),
        grid=grid,
        in_specs=in_specs,
        out_specs=pl.BlockSpec((TN, out_dim), lambda i: (i, 0)),
        compiler_params=_cparams(),
    )(h, *flat)


# --------------------------- geometry (glue, no_grad block) -------------------

def _geometry(state, neighbor, ob_radius):
    x = state[..., :2]                                    # (L, N, 2)
    v = x[1:] - x[:-1]                                    # (L-1, N, 2)
    a = v[1:] - v[:-1]                                    # (L-2, N, 2)
    a = jnp.concatenate([state[1:2, ..., 4:6], a], 0)     # (L-1, N, 2)
    neighbor_x = neighbor[..., :2]
    neighbor_v = neighbor[1:, ..., 2:4]
    dp = neighbor_x - x[:, :, None, :]                    # (L, N, Nn, 2)
    dv = neighbor_v - v[:, :, None, :]                    # (L-1, N, Nn, 2)
    dist = jnp.linalg.norm(dp, axis=-1)                   # (L, N, Nn)
    mask = dist <= ob_radius
    dp, mask, dist = dp[1:], mask[1:], dist[1:]
    dot_dp_v = jnp.sum(dp * v[:, :, None, :], -1)
    bearing = dot_dp_v / (dist * jnp.linalg.norm(v, axis=-1)[..., None])
    bearing = jnp.nan_to_num(bearing, nan=0.0, posinf=0.0, neginf=0.0)
    dot_dp_dv = jnp.sum(dp * dv, -1)
    tau = -dot_dp_dv / jnp.linalg.norm(dv, axis=-1)
    tau = jnp.clip(jnp.nan_to_num(tau, nan=0.0, posinf=0.0, neginf=0.0), 0.0, 7.0)
    mpd = jnp.linalg.norm(dp + tau[..., None] * dv, axis=-1)
    features = jnp.stack([dist, bearing, mpd], -1)        # (L-1, N, Nn, 3)
    return v, a, dp, dv, dist, mask, features


# ------------------------------ model forward ---------------------------------

def gcntf_forward(params, x, neighbor, *, horizon=1, ob_radius=2.0):
    L, N = x.shape[0], x.shape[1]
    Nn = neighbor.shape[2]
    T = L - 1
    v, a, dp, dv, dist, mask, feats = _geometry(x, neighbor, ob_radius)
    adj = mask.astype(jnp.float32)                        # (T, N, Nn)

    # --- dead-timestep elimination: forward() only consumes h[-1], so run the
    # embed / GCN / attention pipeline for t = T-1 only.  adj stays full because
    # the torch.matmul broadcast indexes it by the *agent* (requires N==Nn==T).
    feats_l = feats[-1]                                   # (N, Nn, 3)
    sa_l = jnp.concatenate([v[-1], a[-1]], -1)            # (N, 4)
    dpdv_l = jnp.concatenate([dp[-1], dv[-1]], -1)        # (N, Nn, 4)
    mask_l = adj[-1]                                      # (N, Nn) float {0,1}

    k_l = mlp_pallas(feats_l.reshape(N * Nn, 3), params["embed_k"],
                     (True, True, False)).reshape(N, Nn, -1)
    s_l = mlp_pallas(sa_l, params["embed_s"], (True, False))          # (N, 128)

    # embed_n fused into the GCN kernel; adj read in-place (no adjB/nB broadcast).
    n_gcn_l = gcn_pallas(dpdv_l, adj, params["embed_n"], (True, True, False),
                         params["gcn"])                               # (N, N, 128)

    # embed_q fused into the attention kernel; both reductions on the MXU.
    h = attention_pallas(s_l, k_l, mask_l, n_gcn_l, params["embed_q"],
                         (True, True, False))                         # (N, 256)

    D = []
    for t in range(horizon):
        # p_z(h).mean == loc (the Softplus std head is unused by forward);
        # p_z + dec fused in one kernel on the resident (N, 256) tile.
        d = tail_pallas(h, params["p_z"], (True, True, False),
                        params["dec"], (True, True, False))           # (N, 2)
        D.append(d)
        if t == horizon - 1:
            break
        # TODO(synk): forward() calls self.embed_zd, which is never instantiated
        # in gcntf.__init__ -> horizon > 1 raises in PyTorch; not translated.
        raise NotImplementedError("horizon > 1 requires the undefined self.embed_zd")

    d = jnp.stack(D, 0)                                   # (horizon, N, 2)
    pred = jnp.cumsum(d, axis=0) + x[-1, ..., :2]
    return pred


# ----------------------------- deterministic params ---------------------------

def _linear(key, fan_in, fan_out):
    kw, kb = jax.random.split(key)
    bound = 1.0 / (fan_in ** 0.5)
    w = jax.random.uniform(kw, (fan_in, fan_out), jnp.float32, -bound, bound)
    b = jax.random.uniform(kb, (1, fan_out), jnp.float32, -bound, bound)
    return w, b


def init_params(key, hidden_dim=256, num_gcn_layers=2):
    feature_dim, self_embed, neigh_embed, z_dim, d_dim = 256, 128, 128, 32, 2
    defs = {
        "embed_s": [(4, 64), (64, self_embed)],
        "embed_n": [(4, 64), (64, neigh_embed), (neigh_embed, neigh_embed)],
        "embed_k": [(3, feature_dim), (feature_dim, feature_dim), (feature_dim, feature_dim)],
        # TODO(synk): reference declares embed_q input as hidden_dim_fx=256 but feeds
        # the 128-d s; that Linear cannot run in PyTorch -> use in_dim=128 here.
        "embed_q": [(self_embed, feature_dim), (feature_dim, feature_dim), (feature_dim, feature_dim)],
        "gcn": [(neigh_embed, neigh_embed)] * num_gcn_layers,
        "p_z": [(hidden_dim, hidden_dim), (hidden_dim, hidden_dim), (hidden_dim, z_dim)],
        "dec": [(z_dim + hidden_dim, hidden_dim), (hidden_dim, hidden_dim), (hidden_dim, d_dim)],
    }
    params = {}
    for name, dims in defs.items():
        layers = []
        for fi, fo in dims:
            key, sub = jax.random.split(key)
            layers.append(_linear(sub, fi, fo))
        params[name] = layers
    return params


# --------------------------- pure-JAX f32 reference ---------------------------

def _mlp_ref(x, layers, acts):
    h = x
    for (w, b), act in zip(layers, acts):
        h = h @ w + b[0]
        if act:
            h = jnp.clip(h, 0.0, 6.0)
    return h


def reference_forward(params, x, neighbor, *, horizon=1, ob_radius=2.0):
    T = x.shape[0] - 1
    v, a, dp, dv, dist, mask, feats = _geometry(x, neighbor, ob_radius)
    k = _mlp_ref(feats, params["embed_k"], (True, True, False))
    s = _mlp_ref(jnp.concatenate([v, a], -1), params["embed_s"], (True, False))
    n = _mlp_ref(jnp.concatenate([dp, dv], -1), params["embed_n"], (True, True, False))
    adj = mask.astype(jnp.float32)
    for w, b in params["gcn"]:
        n = jnp.matmul(adj, n)           # same broadcast semantics as torch.matmul
        n = jnp.clip(n @ w + b[0], 0.0, 6.0)
    hs = []
    for t in range(T):
        q = _mlp_ref(s[t], params["embed_q"], (True, True, False))
        e = jnp.squeeze(k[t] @ q[:, :, None], -1)
        e = jnp.where(e >= 0, e, 0.2 * e)
        e = jnp.where(mask[t], e, -jnp.inf)
        p = jnp.exp(e - jnp.max(e, -1, keepdims=True))
        att = jnp.nan_to_num(p / jnp.sum(p, -1, keepdims=True))
        x_t = jnp.squeeze(att[:, None, :] @ n[t], -2)
        hs.append(jnp.concatenate([x_t, s[t]], -1))
    h = hs[-1]
    D = []
    for t in range(horizon):
        z = _mlp_ref(h, params["p_z"], (True, True, False))
        d = _mlp_ref(jnp.concatenate([z, h], -1), params["dec"], (True, True, False))
        D.append(d)
        if t == horizon - 1:
            break
        raise NotImplementedError
    d = jnp.stack(D, 0)
    return jnp.cumsum(d, 0) + x[-1, ..., :2]


# ------------------------------------ main ------------------------------------

if __name__ == "__main__":
    key = jax.random.PRNGKey(0)
    k1, k2, k3, k4 = jax.random.split(key, 4)
    # torch.matmul broadcasting inside gcn_forward / attention requires N == Nn == L-1.
    L, N, Nn = 5, 4, 4
    pos = jax.random.uniform(k1, (L, N, 2), jnp.float32, -1.0, 1.0)
    x = jnp.concatenate([pos, 0.5 * jax.random.normal(k2, (L, N, 4), jnp.float32)], -1)
    off = jax.random.uniform(k3, (L, N, Nn, 2), jnp.float32, -1.5, 1.5)
    neighbor = jnp.concatenate(
        [pos[:, :, None, :] + off, 0.5 * jax.random.normal(k4, (L, N, Nn, 4), jnp.float32)], -1)

    params = init_params(jax.random.PRNGKey(42))

    pred = gcntf_forward(params, x, neighbor, horizon=1, ob_radius=2.0)
    pred = jax.block_until_ready(pred)

    ref = reference_forward(params, x, neighbor, horizon=1, ob_radius=2.0)
    assert pred.shape == (1, N, 2), pred.shape
    assert pred.dtype == jnp.float32
    assert bool(jnp.all(jnp.isfinite(pred)))
    # Tolerance sized for bf16 MXU operands vs. the pure-f32 reference: the
    # prediction goes through ~8 chained 256-wide matmuls plus a softmax, so
    # per-component discrepancies of a few 1e-2 are expected; structural bugs
    # would show up as O(0.3-1) differences.
    assert bool(jnp.allclose(pred, ref, rtol=5e-2, atol=1e-1)), (pred, ref)
    print("KERNEL_OK")
</pallas_src>

<mosaic_0001>
module attributes {stable_mosaic.version = 11 : i64} {
  func.func @kernel(%arg0: i32, %arg1: memref<16x3xf32, #tpu.memory_space<vmem>>, %arg2: memref<3x256xf32, #tpu.memory_space<vmem>>, %arg3: memref<1x256xf32, #tpu.memory_space<vmem>>, %arg4: memref<256x256xbf16, #tpu.memory_space<vmem>>, %arg5: memref<1x256xf32, #tpu.memory_space<vmem>>, %arg6: memref<256x256xbf16, #tpu.memory_space<vmem>>, %arg7: memref<1x256xf32, #tpu.memory_space<vmem>>, %arg8: memref<16x256xf32, #tpu.memory_space<vmem>>) attributes {dimension_semantics = [#tpu.dimension_semantics<parallel>], iteration_bounds = array<i64: 1>, scalar_prefetch = 0 : i64, scratch_operands = 0 : i64, tpu.core_type = #tpu.core_type<tc>, window_params = [{transform_indices = @transform_0, window_bounds = array<i64: 16, 3>}, {pipeline_mode = #tpu.pipeline_mode<synchronous>, transform_indices = @transform_1, window_bounds = array<i64: 3, 256>}, {pipeline_mode = #tpu.pipeline_mode<synchronous>, transform_indices = @transform_2, window_bounds = array<i64: 1, 256>}, {pipeline_mode = #tpu.pipeline_mode<synchronous>, transform_indices = @transform_3, window_bounds = array<i64: 256, 256>}, {pipeline_mode = #tpu.pipeline_mode<synchronous>, transform_indices = @transform_4, window_bounds = array<i64: 1, 256>}, {pipeline_mode = #tpu.pipeline_mode<synchronous>, transform_indices = @transform_5, window_bounds = array<i64: 256, 256>}, {pipeline_mode = #tpu.pipeline_mode<synchronous>, transform_indices = @transform_6, window_bounds = array<i64: 1, 256>}, {transform_indices = @transform_7, window_bounds = array<i64: 16, 256>}]} {
    %c0 = arith.constant 0 : index
    %c0_0 = arith.constant 0 : index
    %0 = vector.load %arg1[%c0, %c0_0] : memref<16x3xf32, #tpu.memory_space<vmem>>, vector<16x3xf32>
    %c0_1 = arith.constant 0 : index
    %c0_2 = arith.constant 0 : index
    %1 = vector.load %arg2[%c0_1, %c0_2] : memref<3x256xf32, #tpu.memory_space<vmem>>, vector<3x256xf32>
    %c0_3 = arith.constant 0 : index
    %c0_4 = arith.constant 0 : index
    %2 = vector.load %arg3[%c0_3, %c0_4] : memref<1x256xf32, #tpu.memory_space<vmem>>, vector<1x256xf32>
    %3 = vector.extract_strided_slice %0 {offsets = [0, 0], sizes = [16, 1], strides = [1, 1]} : vector<16x3xf32> to vector<16x1xf32>
    %4 = vector.extract_strided_slice %1 {offsets = [0, 0], sizes = [1, 256], strides = [1, 1]} : vector<3x256xf32> to vector<1x256xf32>
    %5 = vector.broadcast %3 : vector<16x1xf32> to vector<16x256xf32>
    %6 = vector.broadcast %4 : vector<1x256xf32> to vector<16x256xf32>
    %7 = arith.mulf %5, %6 : vector<16x256xf32>
    %8 = vector.broadcast %2 : vector<1x256xf32> to vector<16x256xf32>
    %9 = arith.addf %7, %8 : vector<16x256xf32>
    %10 = vector.extract_strided_slice %0 {offsets = [0, 1], sizes = [16, 1], strides = [1, 1]} : vector<16x3xf32> to vector<16x1xf32>
    %11 = vector.extract_strided_slice %1 {offsets = [1, 0], sizes = [1, 256], strides = [1, 1]} : vector<3x256xf32> to vector<1x256xf32>
    %12 = vector.broadcast %10 : vector<16x1xf32> to vector<16x256xf32>
    %13 = vector.broadcast %11 : vector<1x256xf32> to vector<16x256xf32>
    %14 = arith.mulf %12, %13 : vector<16x256xf32>
    %15 = arith.addf %9, %14 : vector<16x256xf32>
    %16 = vector.extract_strided_slice %0 {offsets = [0, 2], sizes = [16, 1], strides = [1, 1]} : vector<16x3xf32> to vector<16x1xf32>
    %17 = vector.extract_strided_slice %1 {offsets = [2, 0], sizes = [1, 256], strides = [1, 1]} : vector<3x256xf32> to vector<1x256xf32>
    %18 = vector.broadcast %16 : vector<16x1xf32> to vector<16x256xf32>
    %19 = vector.broadcast %17 : vector<1x256xf32> to vector<16x256xf32>
    %20 = arith.mulf %18, %19 : vector<16x256xf32>
    %21 = arith.addf %15, %20 : vector<16x256xf32>
    %cst = arith.constant 0.000000e+00 : f32
    %cst_5 = arith.constant 6.000000e+00 : f32
    %22 = vector.broadcast %cst : f32 to vector<16x256xf32>
    %23 = arith.maximumf %22, %21 : vector<16x256xf32>
    %24 = vector.broadcast %cst_5 : f32 to vector<16x256xf32>
    %25 = arith.minimumf %24, %23 : vector<16x256xf32>
    %c0_6 = arith.constant 0 : index
    %c0_7 = arith.constant 0 : index
    %26 = vector.load %arg4[%c0_6, %c0_7] : memref<256x256xbf16, #tpu.memory_space<vmem>>, vector<256x256xbf16>
    %c0_8 = arith.constant 0 : index
    %c0_9 = arith.constant 0 : index
    %27 = vector.load %arg5[%c0_8, %c0_9] : memref<1x256xf32, #tpu.memory_space<vmem>>, vector<1x256xf32>
    %28 = arith.truncf %25 : vector<16x256xf32> to vector<16x256xbf16>
    %cst_10 = arith.constant dense<0.000000e+00> : vector<16x256xf32>
    %29 = tpu.matmul %28, %26, %cst_10 {dimension_numbers = #tpu.dot_dimension_numbers<[1], [0], [0], [1], [0, 0, 1, 1], [], []>} : vector<16x256xbf16>, vector<256x256xbf16>, vector<16x256xf32> -> vector<16x256xf32>
    %30 = vector.broadcast %27 : vector<1x256xf32> to vector<16x256xf32>
    %31 = arith.addf %29, %30 : vector<16x256xf32>
    %cst_11 = arith.constant 0.000000e+00 : f32
    %cst_12 = arith.constant 6.000000e+00 : f32
    %32 = vector.broadcast %cst_11 : f32 to vector<16x256xf32>
    %33 = arith.maximumf %32, %31 : vector<16x256xf32>
    %34 = vector.broadcast %cst_12 : f32 to vector<16x256xf32>
    %35 = arith.minimumf %34, %33 : vector<16x256xf32>
    %c0_13 = arith.constant 0 : index
    %c0_14 = arith.constant 0 : index
    %36 = vector.load %arg6[%c0_13, %c0_14] : memref<256x256xbf16, #tpu.memory_space<vmem>>, vector<256x256xbf16>
    %c0_15 = arith.constant 0 : index
    %c0_16 = arith.constant 0 : index
    %37 = vector.load %arg7[%c0_15, %c0_16] : memref<1x256xf32, #tpu.memory_space<vmem>>, vector<1x256xf32>
    %38 = arith.truncf %35 : vector<16x256xf32> to vector<16x256xbf16>
    %cst_17 = arith.constant dense<0.000000e+00> : vector<16x256xf32>
    %39 = tpu.matmul %38, %36, %cst_17 {dimension_numbers = #tpu.dot_dimension_numbers<[1], [0], [0], [1], [0, 0, 1, 1], [], []>} : vector<16x256xbf16>, vector<256x256xbf16>, vector<16x256xf32> -> vector<16x256xf32>
    %40 = vector.broadcast %37 : vector<1x256xf32> to vector<16x256xf32>
    %41 = arith.addf %39, %40 : vector<16x256xf32>
    %c0_18 = arith.constant 0 : index
    %c0_19 = arith.constant 0 : index
    %42 = vector.load %arg8[%c0_18, %c0_19] : memref<16x256xf32, #tpu.memory_space<vmem>>, vector<16x256xf32>
    tpu.vector_store %arg8[%c0_18, %c0_19], %41 {strides = array<i32>} : memref<16x256xf32, #tpu.memory_space<vmem>>, vector<16x256xf32>,
    return
  }
  func.func @transform_0(%arg0: i32) -> (i32, i32) {
    %c0_i32 = arith.constant 0 : i32
    %c0_i32_0 = arith.constant 0 : i32
    return %arg0, %c0_i32 : i32, i32
  }
  func.func @transform_1(%arg0: i32) -> (i32, i32) {
    %c0_i32 = arith.constant 0 : i32
    %c0_i32_0 = arith.constant 0 : i32
    %c0_i32_1 = arith.constant 0 : i32
    return %c0_i32, %c0_i32_0 : i32, i32
  }
  func.func @transform_2(%arg0: i32) -> (i32, i32) {
    %c0_i32 = arith.constant 0 : i32
    %c0_i32_0 = arith.constant 0 : i32
    %c0_i32_1 = arith.constant 0 : i32
    return %c0_i32, %c0_i32_0 : i32, i32
  }
  func.func @transform_3(%arg0: i32) -> (i32, i32) {
    %c0_i32 = arith.constant 0 : i32
    %c0_i32_0 = arith.constant 0 : i32
    %c0_i32_1 = arith.constant 0 : i32
    return %c0_i32, %c0_i32_0 : i32, i32
  }
  func.func @transform_4(%arg0: i32) -> (i32, i32) {
    %c0_i32 = arith.constant 0 : i32
    %c0_i32_0 = arith.constant 0 : i32
    %c0_i32_1 = arith.constant 0 : i32
    return %c0_i32, %c0_i32_0 : i32, i32
  }
  func.func @transform_5(%arg0: i32) -> (i32, i32) {
    %c0_i32 = arith.constant 0 : i32
    %c0_i32_0 = arith.constant 0 : i32
    %c0_i32_1 = arith.constant 0 : i32
    return %c0_i32, %c0_i32_0 : i32, i32
  }
  func.func @transform_6(%arg0: i32) -> (i32, i32) {
    %c0_i32 = arith.constant 0 : i32
    %c0_i32_0 = arith.constant 0 : i32
    %c0_i32_1 = arith.constant 0 : i32
    return %c0_i32, %c0_i32_0 : i32, i32
  }
  func.func @transform_7(%arg0: i32) -> (i32, i32) {
    %c0_i32 = arith.constant 0 : i32
    %c0_i32_0 = arith.constant 0 : i32
    return %arg0, %c0_i32 : i32, i32
  }
}

</mosaic_0001>

<bundles_post_ra>
// kernel: tpu_custom_call.1
= control target key start
LH: loop header
LB: loop body
LE: loop exit
PB: predicated region body
PF: predicated region fallthrough
CT: control target
= control target key end

     0   :  { %12 = vsyncpa [#allocation3], 0  ;;  %s1044_s0 = inlined_call_operand.vmem [shape: f32[16,3], index: 0, kind: input, shape index: {}]   ;;  %s1045_s1 = inlined_call_operand.vmem [shape: f32[3,256], index: 1, kind: input, shape index: {}]   ;;  %s1046_s2 = inlined_call_operand.vmem [shape: f32[1,256], index: 2, kind: input, shape index: {}]   ;;  %s1047_s3 = inlined_call_operand.hbm [shape: bf16[256,256], index: 3, kind: input, shape index: {}]   ;;  %s1048_s4 = inlined_call_operand.vmem [shape: f32[1,256], index: 4, kind: input, shape index: {}]   ;;  %s1049_s5 = inlined_call_operand.hbm [shape: bf16[256,256], index: 5, kind: input, shape index: {}]   ;;  %s1050_s6 = inlined_call_operand.vmem [shape: f32[1,256], index: 6, kind: input, shape index: {}]   ;;  %s1051_s7 = inlined_call_operand.hbm [shape: f32[16,256], index: 7, kind: output, shape index: {}]  }
   0x1   :  { %13 = vsyncpa [#allocation6], 0 }
   0x2   :  { %14 = vsyncpa [#allocation4], 0  ;;  %s951_s24 = smov [#allocation2]  }
   0x3   :  { %s26_s25 = sshll.u32 %s951_s24, 4  ;;  %s27_s25 = int_to_ptr.vmem [resolvable:$true] %s26_s25 }
   0x4   :  { %s893_s26 = scalar_lea.vmem %s27_s25, 4096  ;;  %p898_p1 = scmp.lt.s32.totalorder %s27_s25, %s27_s25 }
   0x5   :  { %p894_p0 = scmp.ne.s32.totalorder %s27_s25, %s893_s26  ;;  %p899_p2 = scmp.lt.s32.totalorder %s893_s26, %s893_s26 }
   0x7   :  { %p900_p3 = por %p899_p2, %p898_p1 }
   0x9   :  { %p901_p4 = pnand %p900_p3, %p894_p0 }
   0xb   :  { %904 = shalt.err (!%p901_p4)
}
   0xc   :  { %s952_s27 = smov 128   ;;  %s953_s28 = smov 8  }
   0xd   :  { %32 = dma.hbm_to_vmem [thread:$0]  %s1047_s3, 4096, %s27_s25, [#allocation3], %s952_s27, %s952_s27, %s953_s28  }
   0xe   :  { %s954_s8 = smov [#allocation5]  }
   0xf   :  { %s40_s9 = sshll.u32 %s954_s8, 4  ;;  %s41_s9 = int_to_ptr.vmem [resolvable:$true] %s40_s9 }
  0x10   :  { %s913_s10 = scalar_lea.vmem %s41_s9, 4096  ;;  %p918_p6 = scmp.lt.s32.totalorder %s41_s9, %s41_s9 }
  0x11   :  { %p914_p5 = scmp.ne.s32.totalorder %s41_s9, %s913_s10  ;;  %p919_p7 = scmp.lt.s32.totalorder %s913_s10, %s913_s10 }
  0x13   :  { %p920_p8 = por %p919_p7, %p918_p6 }
  0x15   :  { %p921_p9 = pnand %p920_p8, %p914_p5 }
  0x17   :  { %924 = shalt.err (!%p921_p9)
}
  0x18   :  { %46 = dma.hbm_to_vmem [thread:$0]  %s1049_s5, 4096, %s41_s9, [#allocation6], %s952_s27, %s952_s27, %s953_s28  }
  0x19   :  { %945 = dma.done.wait [#allocation3], 4096  }
  0x1a   :  { %946 = vsyncadd [#allocation3], 4294963200 }
  0x1b   :  { %947 = dma.done.wait [#allocation6], 4096  }
  0x1c   :  { %948 = vsyncadd [#allocation6], 4294963200  ;;  %v955_v0 = vmov 1   ;;  %v956_v1 = vmov 0   ;;  %v55_v2 = vld [vmem:[%s1044_s0] sm:$0xff]  ;;  %v56_v3 = vld [vmem:[%s1044_s0 + $0x8] sm:$0xff]  ;;  %v70_v61 = vlaneseq }
  0x1d   :  { %786 = vset.pattern.permute.xlu1 %v955_v0  ;;  %785 = vset.pattern.permute.xlu0 %v956_v1  ;;  %v789_v4 = vld [vmem:[#allocation2 + $0x74] ss:$8 sps:$4 sm:$0xff]   ;;  %v791_v5 = vld [vmem:[#allocation2 + $0x70] ss:$8 sps:$4 sm:$0xff]   ;;  %v792_v6 = vld [vmem:[#allocation2 + $0x64] ss:$8 sps:$4 sm:$0xff]  }
  0x1e   :  { %108 = vperm.xlu1 %786, %v55_v2   ;;  %61 = vperm.xlu0 %785, %v55_v2   ;;  %v794_v7 = vld [vmem:[#allocation2 + $0x60] ss:$8 sps:$4 sm:$0xff]   ;;  %v795_v8 = vld [vmem:[#allocation2 + $0x54] ss:$8 sps:$4 sm:$0xff]   ;;  %v797_v9 = vld [vmem:[#allocation2 + $0x50] ss:$8 sps:$4 sm:$0xff]  }
  0x1f   :  { %389 = vmatprep.subr.bf16.mxu0 %v789_v4  ;;  %v957_v10 = vmov 2   ;;  %v798_v11 = vld [vmem:[#allocation2 + $0x44] ss:$8 sps:$4 sm:$0xff]   ;;  %v800_v12 = vld [vmem:[#allocation2 + $0x40] ss:$8 sps:$4 sm:$0xff]   ;;  %v71_v62 = vshrl.u32 %v70_v61, 7 }
  0x20   :  { %390 = vmatpush1.bf16.msra.mxu0 %v791_v5  ;;  %v801_v13 = vld [vmem:[#allocation2 + $0x34] ss:$8 sps:$4 sm:$0xff]   ;;  %v803_v14 = vld [vmem:[#allocation2 + $0x30] ss:$8 sps:$4 sm:$0xff]   ;;  %v804_v15 = vld [vmem:[#allocation2 + $0x24] ss:$8 sps:$4 sm:$0xff]  }
  0x21   :  { %391 = vmatprep.subr.bf16.mxu0 %v792_v6  ;;  %v806_v16 = vld [vmem:[#allocation2 + $0x20] ss:$8 sps:$4 sm:$0xff]   ;;  %v807_v17 = vld [vmem:[#allocation2 + $0x14] ss:$8 sps:$4 sm:$0xff]   ;;  %v809_v18 = vld [vmem:[#allocation2 + $0x10] ss:$8 sps:$4 sm:$0xff]  }
  0x22   :  { %112 = vperm.xlu1 %786, %v56_v3   ;;  %66 = vperm.xlu0 %785, %v56_v3   ;;  %v837_v19 = vld [vmem:[#allocation5 + $0x74] ss:$8 sps:$4 sm:$0xff]   ;;  %v839_v20 = vld [vmem:[#allocation5 + $0x70] ss:$8 sps:$4 sm:$0xff]   ;;  %v840_v21 = vld [vmem:[#allocation5 + $0x64] ss:$8 sps:$4 sm:$0xff]  }
  0x23   :  { %v810_v22 = vld [vmem:[#allocation2 + $0x4] ss:$8 sps:$4 sm:$0xff]   ;;  %646 = vmatprep.subr.bf16.mxu1 %v837_v19  ;;  %v842_v23 = vld [vmem:[#allocation5 + $0x60] ss:$8 sps:$4 sm:$0xff]   ;;  %v843_v24 = vld [vmem:[#allocation5 + $0x54] ss:$8 sps:$4 sm:$0xff]  }
  0x24   :  { %392 = vmatpush1.bf16.msra.mxu0 %v794_v7  ;;  %647 = vmatpush1.bf16.msra.mxu1 %v839_v20  ;;  %v812_v25 = vld [vmem:[#allocation2] ss:$8 sps:$4 sm:$0xff]   ;;  %v813_v26 = vld [vmem:[#allocation2 + $0xf4] ss:$8 sps:$4 sm:$0xff]   ;;  %v845_v27 = vld [vmem:[#allocation5 + $0x50] ss:$8 sps:$4 sm:$0xff]  }
  0x25   :  { %393 = vmatprep.subr.bf16.mxu0 %v795_v8  ;;  %648 = vmatprep.subr.bf16.mxu1 %v840_v21  ;;  %v846_v28 = vld [vmem:[#allocation5 + $0x44] ss:$8 sps:$4 sm:$0xff]   ;;  %v815_v29 = vld [vmem:[#allocation2 + $0xf0] ss:$8 sps:$4 sm:$0xff]   ;;  %v848_v31 = vld [vmem:[#allocation5 + $0x40] ss:$8 sps:$4 sm:$0xff]  }
  0x26   :  { %788 = vset.pattern.permute.xlu1 %v957_v10  ;;  %787 = vset.pattern.permute.xlu0 %v957_v10  ;;  %v816_v30 = vld [vmem:[#allocation2 + $0xe4] ss:$8 sps:$4 sm:$0xff]   ;;  %v849_v32 = vld [vmem:[#allocation5 + $0x34] ss:$8 sps:$4 sm:$0xff]   ;;  %v818_v33 = vld [vmem:[#allocation2 + $0xe0] ss:$8 sps:$4 sm:$0xff]  }
  0x27   :  { %146 = vperm.xlu1 %788, %v56_v3   ;;  %142 = vperm.xlu0 %787, %v55_v2   ;;  %v819_v34 = vld [vmem:[#allocation2 + $0xd4] ss:$8 sps:$4 sm:$0xff]   ;;  %v821_v35 = vld [vmem:[#allocation2 + $0xd0] ss:$8 sps:$4 sm:$0xff]   ;;  %v852_v37 = vld [vmem:[#allocation5 + $0x24] ss:$8 sps:$4 sm:$0xff]  }
  0x28   :  { %394 = vmatpush1.bf16.msra.mxu0 %v797_v9  ;;  %649 = vmatpush1.bf16.msra.mxu1 %v842_v23  ;;  %v851_v36 = vld [vmem:[#allocation5 + $0x30] ss:$8 sps:$4 sm:$0xff]   ;;  %v822_v38 = vld [vmem:[#allocation2 + $0xc4] ss:$8 sps:$4 sm:$0xff]   ;;  %v854_v39 = vld [vmem:[#allocation5 + $0x20] ss:$8 sps:$4 sm:$0xff]  }
  0x29   :  { %395 = vmatprep.subr.bf16.mxu0 %v798_v11  ;;  %650 = vmatprep.subr.bf16.mxu1 %v843_v24  ;;  %v855_v40 = vld [vmem:[#allocation5 + $0x14] ss:$8 sps:$4 sm:$0xff]   ;;  %v824_v41 = vld [vmem:[#allocation2 + $0xc0] ss:$8 sps:$4 sm:$0xff]   ;;  %v857_v43 = vld [vmem:[#allocation5 + $0x10] ss:$8 sps:$4 sm:$0xff]  }
  0x2a   :  { %v825_v42 = vld [vmem:[#allocation2 + $0xb4] ss:$8 sps:$4 sm:$0xff]   ;;  %v858_v44 = vld [vmem:[#allocation5 + $0x4] ss:$8 sps:$4 sm:$0xff]   ;;  %v827_v45 = vld [vmem:[#allocation2 + $0xb0] ss:$8 sps:$4 sm:$0xff]  }
  0x2b   :  { %v828_v46 = vld [vmem:[#allocation2 + $0xa4] ss:$8 sps:$4 sm:$0xff]   ;;  %v860_v47 = vld [vmem:[#allocation5] ss:$8 sps:$4 sm:$0xff]   ;;  %v861_v48 = vld [vmem:[#allocation5 + $0xf4] ss:$8 sps:$4 sm:$0xff]  }
  0x2c   :  { %396 = vmatpush1.bf16.msra.mxu0 %v800_v12  ;;  %651 = vmatpush1.bf16.msra.mxu1 %v845_v27  ;;  %v830_v49 = vld [vmem:[#allocation2 + $0xa0] ss:$8 sps:$4 sm:$0xff]   ;;  %v831_v50 = vld [vmem:[#allocation2 + $0x94] ss:$8 sps:$4 sm:$0xff]   ;;  %v863_v51 = vld [vmem:[#allocation5 + $0xf0] ss:$8 sps:$4 sm:$0xff]  }
  0x2d   :  { %397 = vmatprep.subr.bf16.mxu0 %v801_v13  ;;  %652 = vmatprep.subr.bf16.mxu1 %v846_v28  ;;  %v864_v52 = vld [vmem:[#allocation5 + $0xe4] ss:$8 sps:$4 sm:$0xff]   ;;  %v833_v53 = vld [vmem:[#allocation2 + $0x90] ss:$8 sps:$4 sm:$0xff]   ;;  %v866_v55 = vld [vmem:[#allocation5 + $0xe0] ss:$8 sps:$4 sm:$0xff]  }
  0x2e   :  { %v834_v54 = vld [vmem:[#allocation2 + $0x84] ss:$8 sps:$4 sm:$0xff]   ;;  %v867_v56 = vld [vmem:[#allocation5 + $0xd4] ss:$8 sps:$4 sm:$0xff]   ;;  %v836_v57 = vld [vmem:[#allocation2 + $0x80] ss:$8 sps:$4 sm:$0xff]  }
  0x2f   :  { %v869_v58 = vld [vmem:[#allocation5 + $0xd0] ss:$8 sps:$4 sm:$0xff]   ;;  %v870_v59 = vld [vmem:[#allocation5 + $0xc4] ss:$8 sps:$4 sm:$0xff]   ;;  %v872_v60 = vld [vmem:[#allocation5 + $0xc0] ss:$8 sps:$4 sm:$0xff]  }
  0x30   :  { %398 = vmatpush1.bf16.msra.mxu0 %v803_v14  ;;  %653 = vmatpush1.bf16.msra.mxu1 %v848_v31  ;;  %v1013_v63 = vsub.s32 0, %v71_v62  ;;  %v76_v0 = vsub.s32 4, %v71_v62  ;;  %v57_v1 = vld [vmem:[%s1045_s1] sm:$0x77]  ;;  %v1019_v4 = vsub.s32 1, %v71_v62  ;;  %v121_v5 = vsub.s32 5, %v71_v62 }
  0x31   :  { %399 = vmatprep.subr.bf16.mxu0 %v804_v15  ;;  %654 = vmatprep.subr.bf16.mxu1 %v849_v32  ;;  %v58_v10 = vld [vmem:[%s1046_s2] sm:$0x3]  ;;  %v151_v11 = vsub.s32 2, %v71_v62  ;;  %v155_v12 = vsub.s32 6, %v71_v62  ;;  %v873_v61 = vld [vmem:[#allocation5 + $0xb4] ss:$8 sps:$4 sm:$0xff]  }
  0x32   :  { %v73_v2 = vrot.slane %v57_v1, %v1013_v63  ;;  %v77_v3 = vrot.slane %v57_v1, %v76_v0  ;;  %v118_v8 = vrot.slane %v57_v1, %v1019_v4  ;;  %v122_v9 = vrot.slane %v57_v1, %v121_v5  ;;  %v875_v62 = vld [vmem:[#allocation5 + $0xb0] ss:$8 sps:$4 sm:$0xff]   ;;  %v876_v0 = vld [vmem:[#allocation5 + $0xa4] ss:$8 sps:$4 sm:$0xff]   ;;  %s958_s19 = smov [#allocation7]  }
  0x33   :  { %v96_v15 = vrot.slane %v58_v10, %v1013_v63  ;;  %v152_v21 = vrot.slane %v57_v1, %v151_v11  ;;  %v882_v5 = vld [vmem:[#allocation5 + $0x84] ss:$8 sps:$4 sm:$0xff]   ;;  %s698_s20 = sshll.u32 %s958_s19, 4  ;;  %s699_s20 = int_to_ptr.vmem [resolvable:$true] %s698_s20 }
  0x34   :  { %400 = vmatpush1.bf16.msra.mxu0 %v806_v16  ;;  %655 = vmatpush1.bf16.msra.mxu1 %v851_v36  ;;  %v83_v6 = vrot.slane %v73_v2, %v1013_v63  ;;  %v87_v7 = vrot.slane %v77_v3, %v1013_v63  ;;  %v100_v16 = vrot.slane %v58_v10, %v1019_v4  ;;  %v879_v2 = vld [vmem:[#allocation5 + $0x94] ss:$8 sps:$4 sm:$0xff]   ;;  %v881_v3 = vld [vmem:[#allocation5 + $0x90] ss:$8 sps:$4 sm:$0xff]   ;;  %p930_p11 = scmp.lt.s32.totalorder %s699_s20, %s699_s20 }
  0x35   :  { %401 = vmatprep.subr.bf16.mxu0 %v807_v17  ;;  %656 = vmatprep.subr.bf16.mxu1 %v852_v37  ;;  %v128_v19 = vrot.slane %v118_v8, %v1019_v4  ;;  %v132_v20 = vrot.slane %v122_v9, %v1019_v4  ;;  %v162_v31 = vrot.slane %v152_v21, %v151_v11 }
  0x38   :  { %402 = vmatpush1.bf16.msra.mxu0 %v809_v18  ;;  %657 = vmatpush1.bf16.msra.mxu1 %v854_v39 }
  0x39   :  { %403 = vmatprep.subr.bf16.mxu0 %v810_v22  ;;  %658 = vmatprep.subr.bf16.mxu1 %v855_v40  ;;  %v156_v22 = vrot.slane %v57_v1, %v155_v12  ;;  %v878_v1 = vld [vmem:[#allocation5 + $0xa0] ss:$8 sps:$4 sm:$0xff]  }
  0x3b   :  { %v166_v32 = vrot.slane %v156_v22, %v151_v11 }
  0x3c   :  { %404 = vmatpush1.bf16.msra.mxu0 %v812_v25  ;;  %659 = vmatpush1.bf16.msra.mxu1 %v857_v43 }
  0x3d   :  { %405 = vmatprep.subr.bf16.mxu0 %v813_v26  ;;  %660 = vmatprep.subr.bf16.mxu1 %v858_v44 }
  0x40   :  { %406 = vmatpush2.bf16.msra.mxu0 %v815_v29  ;;  %661 = vmatpush1.bf16.msra.mxu1 %v860_v47 }
  0x41   :  { %407 = vmatprep.subr.bf16.mxu0 %v816_v30  ;;  %662 = vmatprep.subr.bf16.mxu1 %v861_v48 }
  0x44   :  { %408 = vmatpush2.bf16.msra.mxu0 %v818_v33  ;;  %663 = vmatpush2.bf16.msra.mxu1 %v863_v51 }
  0x45   :  { %409 = vmatprep.subr.bf16.mxu0 %v819_v34  ;;  %664 = vmatprep.subr.bf16.mxu1 %v864_v52 }
  0x48   :  { %410 = vmatpush2.bf16.msra.mxu0 %v821_v35  ;;  %665 = vmatpush2.bf16.msra.mxu1 %v866_v55 }
  0x49   :  { %411 = vmatprep.subr.bf16.mxu0 %v822_v38  ;;  %666 = vmatprep.subr.bf16.mxu1 %v867_v56 }
  0x4c   :  { %412 = vmatpush2.bf16.msra.mxu0 %v824_v41  ;;  %667 = vmatpush2.bf16.msra.mxu1 %v869_v58 }
  0x4d   :  { %413 = vmatprep.subr.bf16.mxu0 %v825_v42  ;;  %668 = vmatprep.subr.bf16.mxu1 %v870_v59 }
  0x50   :  { %414 = vmatpush2.bf16.msra.mxu0 %v827_v45  ;;  %669 = vmatpush2.bf16.msra.mxu1 %v872_v60 }
  0x51   :  { %415 = vmatprep.subr.bf16.mxu0 %v828_v46  ;;  %670 = vmatprep.subr.bf16.mxu1 %v873_v61 }
  0x54   :  { %416 = vmatpush2.bf16.msra.mxu0 %v830_v49  ;;  %671 = vmatpush2.bf16.msra.mxu1 %v875_v62 }
  0x55   :  { %417 = vmatprep.subr.bf16.mxu0 %v831_v50  ;;  %672 = vmatprep.subr.bf16.mxu1 %v876_v0 }
  0x58   :  { %418 = vmatpush2.bf16.msra.mxu0 %v833_v53  ;;  %673 = vmatpush2.bf16.msra.mxu1 %v878_v1 }
  0x59   :  { %419 = vmatprep.subr.bf16.mxu0 %v834_v54  ;;  %674 = vmatprep.subr.bf16.mxu1 %v879_v2 }
  0x5c   :  { %420 = vmatpush2.bf16.msra.mxu0 %v836_v57  ;;  %675 = vmatpush2.bf16.msra.mxu1 %v881_v3 }
  0x5d   :  { %676 = vmatprep.subr.bf16.mxu1 %v882_v5 }
  0x99   :  { %v109_v13 = vpop.permute.xlu1 %108  ;;  %v62_v14 = vpop.permute.xlu0 %61 }
  0x9a   :  { %v88_v17 = vmul.f32 %v83_v6, %v62_v14  ;;  %v89_v18 = vmul.f32 %v87_v7, %v62_v14  ;;  %v133_v29 = vmul.f32 %v128_v19, %v109_v13  ;;  %v134_v30 = vmul.f32 %v132_v20, %v109_v13 }
  0x9c   :  { %v103_v25 = vadd.f32 %v96_v15, %v88_v17  ;;  %v104_v26 = vadd.f32 %v100_v16, %v89_v18 }
  0x9d   :  { %v113_v23 = vpop.permute.xlu1 %112  ;;  %v67_v24 = vpop.permute.xlu0 %66 }
  0x9e   :  { %v90_v27 = vmul.f32 %v83_v6, %v67_v24  ;;  %v91_v28 = vmul.f32 %v87_v7, %v67_v24  ;;  %v135_v33 = vmul.f32 %v128_v19, %v113_v23  ;;  %v136_v34 = vmul.f32 %v132_v20, %v113_v23  ;;  %v884_v6 = vld [vmem:[#allocation5 + $0x80] ss:$8 sps:$4 sm:$0xff]  }
  0x9f   :  { %v137_v40 = vadd.f32 %v133_v29, %v103_v25  ;;  %v138_v41 = vadd.f32 %v134_v30, %v104_v26  ;;  %677 = vmatpush2.bf16.msra.mxu1 %v884_v6  ;;  %v215_v7 = vld [vmem:[%s1048_s4] sm:$0x3] }
  0xa0   :  { %v105_v35 = vadd.f32 %v96_v15, %v90_v27  ;;  %v106_v36 = vadd.f32 %v100_v16, %v91_v28  ;;  %v226_v8 = vrot.slane %v215_v7, %v1019_v4  ;;  %v222_v9 = vrot.slane %v215_v7, %v1013_v63  ;;  %v472_v28 = vld [vmem:[%s1050_s6] sm:$0x3]  ;;  %s925_s6 = scalar_lea.vmem %s699_s20, 512 }
  0xa1   :  { %v479_v29 = vrot.slane %v472_v28, %v1013_v63  ;;  %v483_v30 = vrot.slane %v472_v28, %v1019_v4  ;;  %p926_p10 = scmp.ne.s32.totalorder %s699_s20, %s925_s6  ;;  %p931_p12 = scmp.lt.s32.totalorder %s925_s6, %s925_s6 }
  0xa2   :  { %v147_v37 = vpop.permute.xlu1 %146  ;;  %v139_v38 = vadd.f32 %v135_v33, %v105_v35  ;;  %v140_v39 = vadd.f32 %v136_v34, %v106_v36  ;;  %v143_v42 = vpop.permute.xlu0 %142 }
  0xa3   :  { %v169_v43 = vmul.f32 %v162_v31, %v147_v37  ;;  %v170_v44 = vmul.f32 %v166_v32, %v147_v37  ;;  %v167_v45 = vmul.f32 %v162_v31, %v143_v42  ;;  %v168_v46 = vmul.f32 %v166_v32, %v143_v42  ;;  %p932_p13 = por %p931_p12, %p930_p11 }
  0xa5   :  { %v173_v47 = vadd.f32 %v169_v43, %v139_v38  ;;  %v174_v48 = vadd.f32 %v170_v44, %v140_v39  ;;  %v171_v49 = vadd.f32 %v167_v45, %v137_v40  ;;  %v172_v50 = vadd.f32 %v168_v46, %v138_v41  ;;  %p933_p0 = pnand %p932_p13, %p926_p10 }
  0xa7   :  { %v177_v51 = vmax.f32 %v173_v47, 0.0  ;;  %v175_v52 = vmax.f32 %v171_v49, 0.0  ;;  %v176_v53 = vmax.f32 %v172_v50, 0.0  ;;  %v178_v54 = vmax.f32 %v174_v48, 0.0 }
  0xa9   :  { %v181_v55 = vmin.f32 %v177_v51, 6.0  ;;  %v179_v56 = vmin.f32 %v175_v52, 6.0  ;;  %v180_v57 = vmin.f32 %v176_v53, 6.0  ;;  %v182_v58 = vmin.f32 %v178_v54, 6.0 }
  0xab   :  { %v217_v59 = vpack.c.bf16 %v182_v58, %v180_v57  ;;  %v216_v60 = vpack.c.bf16 %v181_v55, %v179_v56 }
  0xad   :  { %421 = vmatprep.mubr.bf16.mxu0 %v217_v59 }
  0xae   :  { %422 = vmatmul.mubr.bf16.vlgmr.msra.gmra.mxu0 %v216_v60 }
 0x16e   :  { %v423_v10 = vpop.f32.mrf.mxu0 }
 0x16f   :  { %v424_v13 = vadd.f32 %v423_v10, %v222_v9 }
 0x170   :  { %v425_v11 = vpop.f32.mrf.mxu0 }
 0x171   :  { %v426_v12 = vadd.f32 %v425_v11, %v226_v8  ;;  %v432_v20 = vmax.f32 %v424_v13, 0.0 }
 0x172   :  { %v427_v14 = vpop.f32.mrf.mxu0 }
 0x173   :  { %v428_v15 = vadd.f32 %v427_v14, %v222_v9  ;;  %v433_v17 = vmax.f32 %v426_v12, 0.0  ;;  %v436_v25 = vmin.f32 %v432_v20, 6.0 }
 0x174   :  { %v429_v16 = vpop.f32.mrf.mxu0 }
 0x175   :  { %v434_v18 = vmax.f32 %v428_v15, 0.0  ;;  %v430_v19 = vadd.f32 %v429_v16, %v226_v8  ;;  %v437_v23 = vmin.f32 %v433_v17, 6.0 }
 0x177   :  { %v435_v21 = vmax.f32 %v430_v19, 0.0  ;;  %v438_v22 = vmin.f32 %v434_v18, 6.0 }
 0x179   :  { %v439_v24 = vmin.f32 %v435_v21, 6.0  ;;  %v473_v27 = vpack.c.bf16 %v438_v22, %v436_v25 }
 0x17b   :  { %v474_v26 = vpack.c.bf16 %v439_v24, %v437_v23 }
 0x17d   :  { %678 = vmatprep.mubr.bf16.mxu1 %v474_v26 }
 0x17e   :  { %679 = vmatmul.mubr.bf16.vlgmr.msra.gmra.mxu1 %v473_v27 }
 0x23e   :  { %v680_v31 = vpop.f32.mrf.mxu1 }
 0x23f   :  { %v681_v32 = vadd.f32 %v680_v31, %v479_v29 }
 0x240   :  { %v682_v33 = vpop.f32.mrf.mxu1 }
 0x241   :  { %689 = vst [vmem:[#allocation7] sm:$0xff] %v681_v32  ;;  %v683_v34 = vadd.f32 %v682_v33, %v483_v30 }
 0x242   :  { %v684_v35 = vpop.f32.mrf.mxu1 }
 0x243   :  { %690 = vst [vmem:[#allocation7 + $0x8] sm:$0xff] %v683_v34  ;;  %v685_v36 = vadd.f32 %v684_v35, %v479_v29 }
 0x244   :  { %v686_v37 = vpop.f32.mrf.mxu1 }
 0x245   :  { %691 = vst [vmem:[#allocation7 + $0x10] sm:$0xff] %v685_v36  ;;  %v687_v38 = vadd.f32 %v686_v37, %v483_v30 }
 0x247   :  { %692 = vst [vmem:[#allocation7 + $0x18] sm:$0xff] %v687_v38 }
 0x248   :  { %936 = shalt.err (!%p933_p0)
}
 0x249   :  { %s959_s21 = smov 256   ;;  %s960_s22 = smov 16  }
 0x24a   :  { %704 = dma.vmem_to_hbm [thread:$0]  %s699_s20, 512, %s1051_s7, [#allocation4], %s959_s21, %s959_s21, %s960_s22  }
 0x24b   :  { %949 = dma.done.wait [#allocation4], 512  }
 0x24c   :  { %950 = vsyncadd [#allocation4], 4294966784 }
 0x24d   :  { %708 = vsyncpa [#allocation3], 1 }
 0x24e   :  { %709 = vsyncpa [#allocation6], 1 }
 0x24f   :  { %710 = vsyncpa [#allocation4], 1 }

</bundles_post_ra>
